<compile_context>
chip_gen: v7x
topology: tpu7x:2x2x1
jax: 0.10.0
libtpu: 0.0.40
codegen_flags: <defaults>
</compile_context>

<pallas_src>
import numpy as np
import jax
import jax.numpy as jnp
from jax import lax
from jax.experimental import pallas as pl
from jax.experimental.pallas import tpu as pltpu

TAU = 12
BETA = 0.5


# --------------------------------------------------------------- fused linear
def _linear_kernel(x_ref, w_ref, b_ref, o_ref):
    # x tile cast to bf16 in VMEM; w arrives bf16; accumulate in f32 on the MXU;
    # store bf16 (memory-bound kernel -> halve the HBM writeback).
    acc = jnp.dot(x_ref[...].astype(jnp.bfloat16), w_ref[...],
                  preferred_element_type=jnp.float32) + b_ref[...]
    o_ref[...] = acc.astype(jnp.bfloat16)


def _pick_tile_m(m_pad, k, n, budget_bytes=36 * 1024 * 1024):
    """Largest row tile dividing m_pad whose double-buffered working set fits."""
    for cand in (2048, 1024, 512, 256, 128, 64, 32, 16, 8):
        if m_pad % cand:
            continue
        work = 2 * cand * k * 4 + k * n * 2 + 2 * cand * n * 2
        if work <= budget_bytes:
            return cand
    return 8


def linear_bf16(x2d, w_bf16, b_f32):
    """x2d: (M, K) f32, w: (K, N) bf16, b: (1, N) f32 -> (M, N) bf16, tiled over M."""
    m, k = x2d.shape
    n = w_bf16.shape[1]
    m_pad = ((m + 7) // 8) * 8
    if m_pad != m:
        x2d = jnp.pad(x2d, ((0, m_pad - m), (0, 0)))
    tile_m = _pick_tile_m(m_pad, k, n)
    out = pl.pallas_call(
        _linear_kernel,
        grid=(m_pad // tile_m,),
        in_specs=[
            pl.BlockSpec((tile_m, k), lambda i: (i, 0)),
            pl.BlockSpec((k, n), lambda i: (0, 0)),
            pl.BlockSpec((1, n), lambda i: (0, 0)),
        ],
        out_specs=pl.BlockSpec((tile_m, n), lambda i: (i, 0)),
        out_shape=jax.ShapeDtypeStruct((m_pad, n), jnp.bfloat16),
        compiler_params=pltpu.CompilerParams(
            dimension_semantics=("parallel",),
            vmem_limit_bytes=48 * 1024 * 1024,
        ),
    )(x2d, w_bf16, b_f32)
    return out[:m] if m_pad != m else out


# ----------------------------------------------- batched GRU recurrence + q head
def _gru_q_kernel(gx_ref, whh_ref, bhh_ref, wq_ref, bq_ref, q_ref):
    # gx_ref : (T, tile_b, 3H) bf16  precomputed input gates, batch-block slab
    # whh_ref: (H, 3H) bf16          concatenated recurrent weights [r|z|n]
    # bhh_ref: (1, 3H) f32 ; wq_ref: (1, H) f32 ; bq_ref: (1, 1) f32
    # q_ref  : (tile_b, T) f32       lane-dense output, single writeback
    T = gx_ref.shape[0]
    Bt = gx_ref.shape[1]
    H = whh_ref.shape[0]

    whh = whh_ref[...]
    bhh = bhh_ref[...]
    wq = wq_ref[...]
    bq = bq_ref[...]
    t_iota = lax.broadcasted_iota(jnp.int32, (1, T), 1)   # hoisted out of the loop

    def step(t, carry):
        h, q_all = carry                                   # (Bt,H) f32, (Bt,T) f32
        xt = gx_ref[t].astype(jnp.float32)                 # (Bt, 3H)
        gh = jnp.dot(h.astype(jnp.bfloat16), whh,
                     preferred_element_type=jnp.float32) + bhh
        # NOTE: for production pad H to a multiple of 128 so these gate slices
        # land on vreg lane boundaries.
        r = jax.nn.sigmoid(xt[:, :H] + gh[:, :H])
        z = jax.nn.sigmoid(xt[:, H:2 * H] + gh[:, H:2 * H])
        n = jnp.tanh(xt[:, 2 * H:] + r * gh[:, 2 * H:])
        h_new = (1.0 - z) * n + z * h
        # q_t on the fly: no h_all scratch, no per-step HBM store.
        q_col = jnp.sum(h_new * wq, axis=-1, keepdims=True) + bq   # (Bt, 1)
        q_all = jnp.where(t_iota == t, q_col, q_all)
        return h_new, q_all

    h0 = jnp.zeros((Bt, H), jnp.float32)
    q0 = jnp.zeros((Bt, T), jnp.float32)
    _, q_all = lax.fori_loop(0, T, step, (h0, q0), unroll=min(T, 8))
    q_ref[...] = q_all                                      # one lane-dense store


def _pick_tile_b(b, candidates=(256, 128, 64, 32, 16, 8)):
    for cand in candidates:
        if b % cand == 0:
            return cand
    return b


def gru_q(gx, whh_bf16, bhh, wq_row, bq):
    """gx: (T, B, 3H) bf16 -> q: (B, T) f32.  Grid over batch blocks ("parallel")."""
    T, B, threeH = gx.shape
    H = threeH // 3
    tile_b = _pick_tile_b(B)
    return pl.pallas_call(
        _gru_q_kernel,
        grid=(B // tile_b,),
        in_specs=[
            pl.BlockSpec((T, tile_b, threeH), lambda b: (0, b, 0)),
            pl.BlockSpec((H, threeH), lambda b: (0, 0)),
            pl.BlockSpec((1, threeH), lambda b: (0, 0)),
            pl.BlockSpec((1, H), lambda b: (0, 0)),
            pl.BlockSpec((1, 1), lambda b: (0, 0)),
        ],
        out_specs=pl.BlockSpec((tile_b, T), lambda b: (b, 0)),
        out_shape=jax.ShapeDtypeStruct((B, T), jnp.float32),
        compiler_params=pltpu.CompilerParams(
            dimension_semantics=("parallel",)),
    )(gx, whh_bf16, bhh, wq_row, bq)


# --------------------------------------------------- TP pooling + masked mean
def _tp_score_kernel(q_ref, len_ref, score_ref):
    q = q_ref[...]                       # (tile_b, T) f32
    lens = len_ref[...]                  # (tile_b, 1) f32
    Bt, T = q.shape
    t_idx = lax.broadcasted_iota(jnp.float32, (Bt, T), 1)
    valid = t_idx < lens

    # l[t] = min over window [t-TAU+1, t]  (left-pad is +inf -> ignored)
    qb = jnp.concatenate(
        [jnp.full((Bt, TAU - 1), jnp.inf, jnp.float32), q], axis=1)
    l = qb[:, TAU - 1:]
    for d in range(1, TAU):
        l = jnp.minimum(l, qb[:, TAU - 1 - d: TAU - 1 - d + T])

    # exp(-q) hoisted: one EUP pass over the whole padded row, then the window
    # loop is pure VPU adds on shifted static slices.  Padding / invalid value
    # 1e4 gives exp(-1e4) == 0 in f32, matching PyTorch exactly; like the
    # reference, exp(-q) may overflow for strongly negative q.
    big = jnp.float32(1e4)
    q_valid = jnp.where(valid, q, big)
    qf = jnp.concatenate(
        [q_valid, jnp.full((Bt, TAU - 1), big, jnp.float32)], axis=1)
    ev = jnp.exp(-qf)
    wv = qf * ev
    sum_v = ev[:, :T]
    sum_w = wv[:, :T]
    for d in range(1, TAU):
        sum_v = sum_v + ev[:, d: d + T]
        sum_w = sum_w + wv[:, d: d + T]

    tp = BETA * (sum_w / sum_v) + (1.0 - BETA) * l
    tp = jnp.where(valid, tp, 0.0)
    score_ref[...] = jnp.sum(tp, axis=1, keepdims=True) / lens


def tp_score(q, lens_col):
    """q: (B, T) f32, lens: (B, 1) f32 -> (B, 1) f32.  Padding/masking fused in."""
    B, T = q.shape
    tile_b = _pick_tile_b(B, candidates=(128, 64, 32, 16, 8))
    return pl.pallas_call(
        _tp_score_kernel,
        grid=(B // tile_b,),
        in_specs=[
            pl.BlockSpec((tile_b, T), lambda i: (i, 0)),
            pl.BlockSpec((tile_b, 1), lambda i: (i, 0)),
        ],
        out_specs=pl.BlockSpec((tile_b, 1), lambda i: (i, 0)),
        out_shape=jax.ShapeDtypeStruct((B, 1), jnp.float32),
        compiler_params=pltpu.CompilerParams(
            dimension_semantics=("parallel",)),
    )(q, lens_col)


# ------------------------------------------------------------------ forward
def prepare_params(p):
    """One-time parameter prep (hoisted out of the forward pass):
    fc0 and the GRU input projection fused into a single matmul:
      gx = (x @ W0 + b0) @ Wih^T + bih = x @ (W0 @ Wih^T) + (b0 @ Wih^T + bih)."""
    return {
        "W_cat": (p["W0"] @ p["Wih"].T).astype(jnp.bfloat16),       # (F, 3H)
        "b_cat": p["b0"] @ p["Wih"].T + p["bih"][None, :],          # (1, 3H)
        "Whh_cat": p["Whh"].T.astype(jnp.bfloat16),                 # (H, 3H)
        "bhh_cat": p["bhh"].reshape(1, -1),
        "Wq_row": p["Wq"].reshape(1, -1),
        "bq": p["bq"].reshape(1, 1),
    }


def vq_forward(x, lengths, prep, hidden_size):
    """x: (B, T, F) f32, lengths: (B,) f32 -> score (B,) f32."""
    B, T, F = x.shape
    H = hidden_size

    # (T, B, F) so the fused linear emits gx directly in (T, B, 3H) layout
    # (per-step GRU slice gx[t] is then a contiguous (tile_b, 3H) slab).
    xT = jnp.transpose(x, (1, 0, 2)).reshape(T * B, F)
    gx = linear_bf16(xT, prep["W_cat"], prep["b_cat"])               # (T*B, 3H) bf16
    gx = gx.reshape(T, B, 3 * H)                                     # free reshape

    q = gru_q(gx, prep["Whh_cat"], prep["bhh_cat"],
              prep["Wq_row"], prep["bq"])                            # (B, T) f32

    lens_col = lengths.reshape(B, 1).astype(jnp.float32)
    score = tp_score(q, lens_col)                                    # (B, 1)
    return score[:, 0]


# ------------------------------------------------------------ pure-JAX reference
def vq_reference(x, lengths, p, hidden_size):
    H = hidden_size
    xr = x @ p["W0"] + p["b0"]                                       # (B,T,R)
    B, T, _ = xr.shape

    def step(h, xt):
        gi = xt @ p["Wih"].T + p["bih"]
        gh = h @ p["Whh"].T + p["bhh"]
        r = jax.nn.sigmoid(gi[:, :H] + gh[:, :H])
        z = jax.nn.sigmoid(gi[:, H:2 * H] + gh[:, H:2 * H])
        n = jnp.tanh(gi[:, 2 * H:] + r * gh[:, 2 * H:])
        h_new = (1.0 - z) * n + z * h
        return h_new, h_new

    h0 = jnp.zeros((B, H), jnp.float32)
    _, outs = jax.lax.scan(step, h0, jnp.transpose(xr, (1, 0, 2)))
    outs = jnp.transpose(outs, (1, 0, 2))                            # (B,T,H)
    q = (outs @ p["Wq"].T + p["bq"])[..., 0]                         # (B,T)

    scores = []
    for i in range(B):
        L = int(lengths[i])
        qi = np.asarray(q[i, :L])
        l = np.array([np.min(qi[max(0, t - TAU + 1): t + 1]) for t in range(L)])
        w = qi * np.exp(-qi)
        v = np.exp(-qi)
        m = np.array([np.sum(w[t:min(t + TAU, L)]) / np.sum(v[t:min(t + TAU, L)])
                      for t in range(L)])
        tp = BETA * m + (1.0 - BETA) * l
        scores.append(np.mean(tp))
    return np.array(scores, dtype=np.float32)


# ----------------------------------------------------------------------- main
if __name__ == "__main__":
    B, T = 2, 16
    input_size, reduced_size, hidden_size = 64, 32, 32

    key = jax.random.PRNGKey(0)
    ks = jax.random.split(key, 10)

    def u(k, shape, bound):
        return jax.random.uniform(k, shape, jnp.float32, -bound, bound)

    bf = 1.0 / np.sqrt(input_size)
    bh = 1.0 / np.sqrt(hidden_size)
    params = {
        # fc0: weight (R, F) stored transposed as (F, R)
        "W0": u(ks[0], (input_size, reduced_size), bf),
        "b0": u(ks[1], (1, reduced_size), bf),
        # GRU (gate order r, z, n like PyTorch)
        "Wih": u(ks[2], (3 * hidden_size, reduced_size), bh),
        "Whh": u(ks[3], (3 * hidden_size, hidden_size), bh),
        "bih": u(ks[4], (3 * hidden_size,), bh),
        "bhh": u(ks[5], (3 * hidden_size,), bh),
        # q head
        "Wq": u(ks[6], (1, hidden_size), bh),
        "bq": u(ks[7], (1,), bh),
    }

    x = jax.random.normal(ks[8], (B, T, input_size), jnp.float32)
    # TODO(synk): per-sample dynamic lengths are handled with static T + masking
    # (PyTorch's Python loop over variable-length slices has no direct equivalent).
    input_length = jnp.array([16.0, 11.0], dtype=jnp.float32)

    prep = prepare_params(params)                 # one-time parameter preparation
    score = vq_forward(x, input_length, prep, hidden_size)
    score = jax.block_until_ready(score)

    ref = vq_reference(x, input_length, params, hidden_size)
    # Tolerance reflects bf16 MXU operands + bf16-stored gate pre-activations
    # (gx) vs the pure-f32 reference.
    if not np.allclose(np.asarray(score), ref, rtol=3e-2, atol=3e-2):
        raise AssertionError(f"mismatch: pallas={np.asarray(score)} ref={ref}")

    print("KERNEL_OK")
</pallas_src>

<mosaic_0001>
module attributes {stable_mosaic.version = 11 : i64} {
  func.func @_linear_kernel(%arg0: i32, %arg1: memref<32x64xf32, #tpu.memory_space<vmem>>, %arg2: memref<64x96xbf16, #tpu.memory_space<vmem>>, %arg3: memref<1x96xf32, #tpu.memory_space<vmem>>, %arg4: memref<32x96xbf16, #tpu.memory_space<vmem>>) attributes {dimension_semantics = [#tpu.dimension_semantics<parallel>], iteration_bounds = array<i64: 1>, scalar_prefetch = 0 : i64, scratch_operands = 0 : i64, tpu.core_type = #tpu.core_type<tc>, window_params = [{transform_indices = @transform_0, window_bounds = array<i64: 32, 64>}, {pipeline_mode = #tpu.pipeline_mode<synchronous>, transform_indices = @transform_1, window_bounds = array<i64: 64, 96>}, {pipeline_mode = #tpu.pipeline_mode<synchronous>, transform_indices = @transform_2, window_bounds = array<i64: 1, 96>}, {transform_indices = @transform_3, window_bounds = array<i64: 32, 96>}]} {
    %c0 = arith.constant 0 : index
    %c0_0 = arith.constant 0 : index
    %0 = vector.load %arg1[%c0, %c0_0] : memref<32x64xf32, #tpu.memory_space<vmem>>, vector<32x64xf32>
    %1 = arith.truncf %0 : vector<32x64xf32> to vector<32x64xbf16>
    %c0_1 = arith.constant 0 : index
    %c0_2 = arith.constant 0 : index
    %2 = vector.load %arg2[%c0_1, %c0_2] : memref<64x96xbf16, #tpu.memory_space<vmem>>, vector<64x96xbf16>
    %cst = arith.constant dense<0.000000e+00> : vector<32x96xf32>
    %3 = tpu.matmul %1, %2, %cst {dimension_numbers = #tpu.dot_dimension_numbers<[1], [0], [0], [1], [0, 0, 1, 1], [], []>} : vector<32x64xbf16>, vector<64x96xbf16>, vector<32x96xf32> -> vector<32x96xf32>
    %c0_3 = arith.constant 0 : index
    %c0_4 = arith.constant 0 : index
    %4 = vector.load %arg3[%c0_3, %c0_4] : memref<1x96xf32, #tpu.memory_space<vmem>>, vector<1x96xf32>
    %5 = vector.broadcast %4 : vector<1x96xf32> to vector<32x96xf32>
    %6 = arith.addf %3, %5 : vector<32x96xf32>
    %7 = arith.truncf %6 : vector<32x96xf32> to vector<32x96xbf16>
    %c0_5 = arith.constant 0 : index
    %c0_6 = arith.constant 0 : index
    %8 = vector.load %arg4[%c0_5, %c0_6] : memref<32x96xbf16, #tpu.memory_space<vmem>>, vector<32x96xbf16>
    tpu.vector_store %arg4[%c0_5, %c0_6], %7 {strides = array<i32>} : memref<32x96xbf16, #tpu.memory_space<vmem>>, vector<32x96xbf16>,
    return
  }
  func.func @transform_0(%arg0: i32) -> (i32, i32) {
    %c0_i32 = arith.constant 0 : i32
    %c0_i32_0 = arith.constant 0 : i32
    return %arg0, %c0_i32 : i32, i32
  }
  func.func @transform_1(%arg0: i32) -> (i32, i32) {
    %c0_i32 = arith.constant 0 : i32
    %c0_i32_0 = arith.constant 0 : i32
    %c0_i32_1 = arith.constant 0 : i32
    return %c0_i32, %c0_i32_0 : i32, i32
  }
  func.func @transform_2(%arg0: i32) -> (i32, i32) {
    %c0_i32 = arith.constant 0 : i32
    %c0_i32_0 = arith.constant 0 : i32
    %c0_i32_1 = arith.constant 0 : i32
    return %c0_i32, %c0_i32_0 : i32, i32
  }
  func.func @transform_3(%arg0: i32) -> (i32, i32) {
    %c0_i32 = arith.constant 0 : i32
    %c0_i32_0 = arith.constant 0 : i32
    return %arg0, %c0_i32 : i32, i32
  }
}

</mosaic_0001>

<bundles_post_ra>
// kernel: tpu_custom_call.1
= control target key start
LH: loop header
LB: loop body
LE: loop exit
PB: predicated region body
PF: predicated region fallthrough
CT: control target
= control target key end

     0   :  { %8 = vsyncpa [#allocation3], 0  ;;  %s376_s0 = inlined_call_operand.hbm [shape: f32[32,64], index: 0, kind: input, shape index: {}]   ;;  %s377_s1 = inlined_call_operand.hbm [shape: bf16[64,96], index: 1, kind: input, shape index: {}]   ;;  %s378_s2 = inlined_call_operand.vmem [shape: f32[1,96], index: 2, kind: input, shape index: {}]   ;;  %s379_s3 = inlined_call_operand.hbm [shape: bf16[32,96], index: 3, kind: output, shape index: {}]  }
   0x1   :  { %9 = vsyncpa [#allocation6], 0 }
   0x2   :  { %10 = vsyncpa [#allocation4], 0  ;;  %s300_s12 = smov [#allocation2]   ;;  %s228_s16 = scalar_lea.hbm %s376_s0, 512 }
   0x3   :  { %s16_s13 = sshll.u32 %s300_s12, 4  ;;  %p229_p0 = scmp.ne.s32.totalorder %s376_s0, %s228_s16  ;;  %s17_s13 = int_to_ptr.vmem [resolvable:$true] %s16_s13 }
   0x4   :  { %p232_p1 = scmp.lt.u32.totalorder %s228_s16, %s376_s0 }
   0x6   :  { %p234_p2 = pnand %p232_p1, %p229_p0 }
   0x8   :  { %237 = shalt.err (!%p234_p2)
}
   0x9   :  { %s238_s21 = scalar_lea.vmem %s17_s13, 512  ;;  %p243_p4 = scmp.lt.s32.totalorder %s17_s13, %s17_s13 }
   0xa   :  { %p239_p3 = scmp.ne.s32.totalorder %s17_s13, %s238_s21  ;;  %p244_p5 = scmp.lt.s32.totalorder %s238_s21, %s238_s21 }
   0xc   :  { %p245_p6 = por %p244_p5, %p243_p4 }
   0xe   :  { %p246_p7 = pnand %p245_p6, %p239_p3 }
  0x10   :  { %249 = shalt.err (!%p246_p7)
}
  0x11   :  { %s301_s22 = smov 128   ;;  %s302_s23 = smov 8  }
  0x12   :  { %22 = dma.hbm_to_vmem [thread:$0]  %s376_s0, 512, %s17_s13, [#allocation3], %s301_s22, %s301_s22, %s302_s23  }
  0x13   :  { %s303_s26 = smov [#allocation5]   ;;  %s250_s30 = scalar_lea.hbm %s377_s1, 512 }
  0x14   :  { %s28_s27 = sshll.u32 %s303_s26, 4  ;;  %p251_p8 = scmp.ne.s32.totalorder %s377_s1, %s250_s30  ;;  %s29_s27 = int_to_ptr.vmem [resolvable:$true] %s28_s27 }
  0x15   :  { %p254_p9 = scmp.lt.u32.totalorder %s250_s30, %s377_s1 }
  0x17   :  { %p256_p10 = pnand %p254_p9, %p251_p8 }
  0x19   :  { %259 = shalt.err (!%p256_p10)
}
  0x1a   :  { %s260_s8 = scalar_lea.vmem %s29_s27, 512  ;;  %p265_p12 = scmp.lt.s32.totalorder %s29_s27, %s29_s27 }
  0x1b   :  { %p261_p11 = scmp.ne.s32.totalorder %s29_s27, %s260_s8  ;;  %p266_p13 = scmp.lt.s32.totalorder %s260_s8, %s260_s8 }
  0x1d   :  { %p267_p0 = por %p266_p13, %p265_p12 }
  0x1f   :  { %p268_p1 = pnand %p267_p0, %p261_p11 }
  0x21   :  { %271 = shalt.err (!%p268_p1)
}
  0x22   :  { %s304_s0 = smov 64   ;;  %s305_s9 = smov 4  }
  0x23   :  { %34 = dma.hbm_to_vmem [thread:$0]  %s377_s1, 512, %s29_s27, [#allocation6], %s304_s0, %s304_s0, %s305_s9  }
  0x24   :  { %294 = dma.done.wait [#allocation3], 512  }
  0x25   :  { %295 = vsyncadd [#allocation3], 4294966784 }
  0x26   :  { %296 = dma.done.wait [#allocation6], 512  }
  0x27   :  { %297 = vsyncadd [#allocation6], 4294966784  ;;  %v224_v0 = vld [vmem:[#allocation5] sm:$0xff]   ;;  %v225_v1 = vld [vmem:[#allocation5 + $0x8] sm:$0xff]   ;;  %vm89_vm0 = vcmask 523264   ;;  %vm161_vm1 = vcmask 781312  }
  0x28   :  { %205 = vmatprep.subr.bf16.mxu0 %v224_v0  ;;  %v226_v2 = vld [vmem:[#allocation5 + $0x10] sm:$0xff]   ;;  %v44_v3 = vld [vmem:[#allocation2] sm:$0xff]  ;;  %v45_v4 = vld [vmem:[#allocation2 + $0x8] sm:$0xff]  ;;  %s306_s13 = smov [#allocation7]  }
  0x29   :  { %206 = vmatpush3.bf16.msra.mxu0 %v224_v0  ;;  %v48_v5 = vpack.c.bf16 %v45_v4, %v44_v3  ;;  %v227_v6 = vld [vmem:[#allocation5 + $0x18] sm:$0xff]   ;;  %v46_v7 = vld [vmem:[#allocation2 + $0x10] sm:$0xff]  ;;  %v184_v10 = vld [vmem:[%s378_s2] ss:$0 sm:$0xff]  ;;  %s171_s14 = sshll.u32 %s306_s13, 4  ;;  %s172_s14 = int_to_ptr.vmem [resolvable:$true] %s171_s14 }
  0x2a   :  { %207 = vmatprep.subr.bf16.mxu0 %v225_v1  ;;  %v47_v8 = vld [vmem:[#allocation2 + $0x18] sm:$0xff]  ;;  %s272_s2 = scalar_lea.vmem %s172_s14, 256  ;;  %p277_p3 = scmp.lt.s32.totalorder %s172_s14, %s172_s14 }
  0x2b   :  { %213 = vmatprep.mubr.msk.bf16.mxu0 %vm89_vm0, %v48_v5  ;;  %v49_v9 = vpack.c.bf16 %v47_v8, %v46_v7  ;;  %p273_p2 = scmp.ne.s32.totalorder %s172_s14, %s272_s2  ;;  %p278_p4 = scmp.lt.s32.totalorder %s272_s2, %s272_s2 }
  0x2d   :  { %208 = vmatpush3.bf16.msra.mxu0 %v225_v1  ;;  %p279_p5 = por %p278_p4, %p277_p3 }
  0x2e   :  { %209 = vmatprep.subr.bf16.mxu0 %v226_v2 }
  0x2f   :  { %p280_p6 = pnand %p279_p5, %p273_p2 }
  0x31   :  { %210 = vmatpush3.bf16.msra.mxu0 %v226_v2 }
  0x32   :  { %211 = vmatprep.subr.bf16.mxu0 %v227_v6 }
  0x35   :  { %212 = vmatpush3.bf16.msra.mxu0 %v227_v6 }
  0x38   :  { %214 = vmatmul.mubr.msk.bf16.vlgmr.msra.gmra.mrb[0].mxu0 %vm89_vm0, %v49_v9 }
 0x10b   :  { %v215_v11 = vpop.f32.mrb[0].mxu0 }
 0x10c   :  { %v139_v12 = vadd.f32 %v215_v11, %v184_v10  ;;  %v130_v13 = vpop.f32.mrb[1].mxu0 }
 0x10d   :  { %v131_v14 = vadd.f32 %v184_v10, %v130_v13  ;;  %v216_v15 = vpop.f32.mrb[2].mxu0 }
 0x10e   :  { %v197_v16 = vpack.c.bf16 %v139_v12, %v139_v12  ;;  %v142_v17 = vadd.f32 %v216_v15, %v184_v10  ;;  %v133_v18 = vpop.f32.mrb[3].mxu0 }
 0x10f   :  { %v195_v19 = vpack.c.bf16 %v131_v14, %v131_v14  ;;  %v134_v20 = vadd.f32 %v184_v10, %v133_v18 }
 0x110   :  { %164 = vst.msk [vmem:[#allocation7 + $0x8] sm:$0xf] %vm161_vm1, %v197_v16  ;;  %v198_v21 = vpack.c.bf16 %v142_v17, %v142_v17 }
 0x111   :  { %162 = vst.msk [vmem:[#allocation7] sm:$0xf] %vm161_vm1, %v195_v19  ;;  %v196_v22 = vpack.c.bf16 %v134_v20, %v134_v20 }
 0x112   :  { %165 = vst.msk [vmem:[#allocation7 + $0xc] sm:$0xf] %vm161_vm1, %v198_v21 }
 0x113   :  { %163 = vst.msk [vmem:[#allocation7 + $0x4] sm:$0xf] %vm161_vm1, %v196_v22 }
 0x114   :  { %283 = shalt.err (!%p280_p6)
}
 0x115   :  { %s284_s17 = scalar_lea.hbm %s379_s3, 256 }
 0x116   :  { %p285_p7 = scmp.ne.s32.totalorder %s379_s3, %s284_s17  ;;  %p288_p8 = scmp.lt.u32.totalorder %s284_s17, %s379_s3 }
 0x118   :  { %p290_p9 = pnand %p288_p8, %p285_p7 }
 0x11a   :  { %293 = shalt.err (!%p290_p9)
}
 0x11b   :  { %177 = dma.vmem_to_hbm [thread:$0]  %s172_s14, 256, %s379_s3, [#allocation4], %s304_s0, %s304_s0, %s305_s9  }
 0x11c   :  { %298 = dma.done.wait [#allocation4], 256  }
 0x11d   :  { %299 = vsyncadd [#allocation4], 4294967040 }
 0x11e   :  { %181 = vsyncpa [#allocation3], 1 }
 0x11f   :  { %182 = vsyncpa [#allocation6], 1 }
 0x120   :  { %183 = vsyncpa [#allocation4], 1 }

</bundles_post_ra>
